<compile_context>
chip_gen: v7x
topology: tpu7x:2x2x1
jax: 0.10.0
libtpu: 0.0.40
codegen_flags: <defaults>
</compile_context>

<pallas_src>
import jax
import jax.numpy as jnp
from jax.experimental import pallas as pl
from jax.experimental.pallas import tpu as pltpu

LANES = 128                      # vreg lane width  -> lane-dense stores
SUBLANES = 8                     # vreg sublane height (32-bit)
DEFAULT_BLOCK_BYTES = 2 * 1024 * 1024   # ~2 MiB per (tm, 128) block


def _relu_exp_kernel(x_ref, o_ref):
    # relu on the VPU, exp on the EUP (separate VLIW slots -> overlapped).
    x = x_ref[...]
    o_ref[...] = jnp.exp(jnp.maximum(x, 0.0)).astype(o_ref.dtype)


def _round_up(a, b):
    return -(-a // b) * b


def relu_exp_pallas(x, block_bytes=DEFAULT_BLOCK_BYTES):
    """Elementwise exp(relu(x)) for any-shaped float tensor."""
    orig_shape = x.shape
    dtype = x.dtype
    n = x.size
    itemsize = jnp.dtype(dtype).itemsize

    # Sub-32-bit dtypes pack along sublanes (bf16 vreg is [16,128], int8/fp8
    # [32,128]); align the row axis to the packed tile so interior blocks get
    # unmasked stores for every supported dtype.
    packing = max(1, 4 // itemsize)
    row_align = SUBLANES * packing

    rows = pl.cdiv(n, LANES)
    rows_aligned = _round_up(rows, row_align)   # worst-case pad < row_align*128 elems

    # Tile height: ~block_bytes per block, a multiple of the packed sublane tile.
    tm = max(row_align,
             (block_bytes // (LANES * itemsize)) // row_align * row_align)
    tm = min(tm, rows_aligned)
    grid = (pl.cdiv(rows_aligned, tm),)         # ragged last block is masked by Pallas

    padded_n = rows_aligned * LANES
    flat = x.reshape(-1)
    if padded_n != n:
        # tiny pad; exp(relu(0)) = 1 in the pad region, sliced away below.
        flat = jnp.pad(flat, (0, padded_n - n))
    x2d = flat.reshape(rows_aligned, LANES)

    out2d = pl.pallas_call(
        _relu_exp_kernel,
        out_shape=jax.ShapeDtypeStruct((rows_aligned, LANES), dtype),
        grid=grid,
        in_specs=[pl.BlockSpec((tm, LANES), lambda i: (i, 0))],
        out_specs=pl.BlockSpec((tm, LANES), lambda i: (i, 0)),
        compiler_params=pltpu.CompilerParams(
            # embarrassingly parallel row tiles: shards across TCs on v7x,
            # harmless elsewhere.
            dimension_semantics=("parallel",),
        ),
        cost_estimate=pl.CostEstimate(
            flops=n,                              # one max per element
            transcendentals=n,                    # one exp per element
            bytes_accessed=2 * padded_n * itemsize,   # actual streamed bytes
        ),
    )(x2d)

    if padded_n != n:
        return out2d.reshape(-1)[:n].reshape(orig_shape)
    return out2d.reshape(orig_shape)


if __name__ == "__main__":
    key = jax.random.PRNGKey(0)
    x = jax.random.normal(key, (2, 4, 16, 16), dtype=jnp.float32)

    out = jax.block_until_ready(relu_exp_pallas(x))

    ref = jnp.exp(jnp.maximum(x, 0.0))
    assert out.shape == x.shape, out.shape
    assert jnp.allclose(out, ref, atol=1e-6, rtol=1e-6)

    print("KERNEL_OK")
</pallas_src>

<mosaic_0001>
module attributes {stable_mosaic.version = 11 : i64} {
  func.func @_relu_exp_kernel(%arg0: i32, %arg1: memref<16x128xf32, #tpu.memory_space<vmem>>, %arg2: memref<16x128xf32, #tpu.memory_space<vmem>>) attributes {dimension_semantics = [#tpu.dimension_semantics<parallel>], iteration_bounds = array<i64: 1>, scalar_prefetch = 0 : i64, scratch_operands = 0 : i64, tpu.core_type = #tpu.core_type<tc>, window_params = [{transform_indices = @transform_0, window_bounds = array<i64: 16, 128>}, {transform_indices = @transform_1, window_bounds = array<i64: 16, 128>}]} {
    %c0 = arith.constant 0 : index
    %c0_0 = arith.constant 0 : index
    %0 = vector.load %arg1[%c0, %c0_0] : memref<16x128xf32, #tpu.memory_space<vmem>>, vector<16x128xf32>
    %cst = arith.constant 0.000000e+00 : f32
    %1 = vector.broadcast %cst : f32 to vector<16x128xf32>
    %2 = arith.maximumf %0, %1 : vector<16x128xf32>
    %3 = math.exp %2 : vector<16x128xf32>
    %c0_1 = arith.constant 0 : index
    %c0_2 = arith.constant 0 : index
    %4 = vector.load %arg2[%c0_1, %c0_2] : memref<16x128xf32, #tpu.memory_space<vmem>>, vector<16x128xf32>
    tpu.vector_store %arg2[%c0_1, %c0_2], %3 {strides = array<i32>} : memref<16x128xf32, #tpu.memory_space<vmem>>, vector<16x128xf32>,
    return
  }
  func.func @transform_0(%arg0: i32) -> (i32, i32) {
    %c0_i32 = arith.constant 0 : i32
    %c0_i32_0 = arith.constant 0 : i32
    return %arg0, %c0_i32 : i32, i32
  }
  func.func @transform_1(%arg0: i32) -> (i32, i32) {
    %c0_i32 = arith.constant 0 : i32
    %c0_i32_0 = arith.constant 0 : i32
    return %arg0, %c0_i32 : i32, i32
  }
}

</mosaic_0001>

<bundles_post_ra>
// kernel: tpu_custom_call.1
= control target key start
LH: loop header
LB: loop body
LE: loop exit
PB: predicated region body
PF: predicated region fallthrough
CT: control target
= control target key end

     0   :  { %6 = vsyncpa [#allocation3], 0  ;;  %s150_s0 = inlined_call_operand.hbm [shape: f32[16,128], index: 0, kind: input, shape index: {}]   ;;  %s151_s1 = inlined_call_operand.hbm [shape: f32[16,128], index: 1, kind: output, shape index: {}]  }
   0x1   :  { %7 = vsyncpa [#allocation4], 0  ;;  %s106_s6 = smov [#allocation2]   ;;  %s58_s10 = scalar_lea.hbm %s150_s0, 256 }
   0x2   :  { %s13_s7 = sshll.u32 %s106_s6, 4  ;;  %p59_p0 = scmp.ne.s32.totalorder %s150_s0, %s58_s10  ;;  %s14_s7 = int_to_ptr.vmem [resolvable:$true] %s13_s7 }
   0x3   :  { %p62_p1 = scmp.lt.u32.totalorder %s58_s10, %s150_s0 }
   0x5   :  { %p64_p2 = pnand %p62_p1, %p59_p0 }
   0x7   :  { %67 = shalt.err (!%p64_p2)
}
   0x8   :  { %s68_s15 = scalar_lea.vmem %s14_s7, 256  ;;  %p73_p4 = scmp.lt.s32.totalorder %s14_s7, %s14_s7 }
   0x9   :  { %p69_p3 = scmp.ne.s32.totalorder %s14_s7, %s68_s15  ;;  %p74_p5 = scmp.lt.s32.totalorder %s68_s15, %s68_s15 }
   0xb   :  { %p75_p6 = por %p74_p5, %p73_p4 }
   0xd   :  { %p76_p7 = pnand %p75_p6, %p69_p3 }
   0xf   :  { %79 = shalt.err (!%p76_p7)
}
  0x10   :  { %s107_s16 = smov 128   ;;  %s108_s17 = smov 8  }
  0x11   :  { %19 = dma.hbm_to_vmem [thread:$0]  %s150_s0, 256, %s14_s7, [#allocation3], %s107_s16, %s107_s16, %s108_s17  }
  0x12   :  { %102 = dma.done.wait [#allocation3], 256  }
  0x13   :  { %103 = vsyncadd [#allocation3], 4294967040  ;;  %v23_v0 = vld [vmem:[#allocation2] sm:$0xff]  ;;  %v24_v1 = vld [vmem:[#allocation2 + $0x8] sm:$0xff]  ;;  %s109_s20 = smov [#allocation5]  }
  0x14   :  { %v25_v2 = vmax.f32 %v23_v0, 0.0  ;;  %v26_v3 = vmax.f32 %v24_v1, 0.0  ;;  %s38_s21 = sshll.u32 %s109_s20, 4  ;;  %s39_s21 = int_to_ptr.vmem [resolvable:$true] %s38_s21 }
  0x15   :  { %s80_s22 = scalar_lea.vmem %s39_s21, 256  ;;  %p85_p9 = scmp.lt.s32.totalorder %s39_s21, %s39_s21 }
  0x16   :  { %v27_v4 = vmul.f32 1.442695, %v25_v2  ;;  %v29_v5 = vmul.f32 1.442695, %v26_v3  ;;  %p81_p8 = scmp.ne.s32.totalorder %s39_s21, %s80_s22  ;;  %p86_p10 = scmp.lt.s32.totalorder %s80_s22, %s80_s22 }
  0x18   :  { %54 = vpow2.f32 %v27_v4  ;;  %p87_p11 = por %p86_p10, %p85_p9 }
  0x19   :  { %56 = vpow2.f32 %v29_v5 }
  0x1a   :  { %p88_p12 = pnand %p87_p11, %p81_p8 }
  0x22   :  { %v55_v6 = vpop.eup %54 }
  0x23   :  { %v57_v7 = vpop.eup %56  ;;  %31 = vst [vmem:[#allocation5] sm:$0xff] %v55_v6 }
  0x24   :  { %32 = vst [vmem:[#allocation5 + $0x8] sm:$0xff] %v57_v7 }
  0x25   :  { %91 = shalt.err (!%p88_p12)
}
  0x26   :  { %s92_s24 = scalar_lea.hbm %s151_s1, 256 }
  0x27   :  { %p93_p13 = scmp.ne.s32.totalorder %s151_s1, %s92_s24  ;;  %p96_p0 = scmp.lt.u32.totalorder %s92_s24, %s151_s1 }
  0x29   :  { %p98_p1 = pnand %p96_p0, %p93_p13 }
  0x2b   :  { %101 = shalt.err (!%p98_p1)
}
  0x2c   :  { %44 = dma.vmem_to_hbm [thread:$0]  %s39_s21, 256, %s151_s1, [#allocation4], %s107_s16, %s107_s16, %s108_s17  }
  0x2d   :  { %104 = dma.done.wait [#allocation4], 256  }
  0x2e   :  { %105 = vsyncadd [#allocation4], 4294967040 }
  0x2f   :  { %48 = vsyncpa [#allocation3], 1 }
  0x30   :  { %49 = vsyncpa [#allocation4], 1 }

</bundles_post_ra>
